<compile_context>
chip_gen: v5e
topology: v5e:2x2
jax: 0.10.0
libtpu: 0.0.40
codegen_flags: <defaults>
</compile_context>

<pallas_src>
import functools

import jax
import jax.numpy as jnp
from jax.experimental import pallas as pl
from jax.experimental.pallas import tpu as pltpu


def _pnn_kernel(x_ref, v_ref, b_ref, o_ref, *, num_fields, embed_dim, out_width):
    """Fused PNN forward for one batch row-block.

    x_ref : (TM, F, D)   input block in its ORIGINAL layout (no wrapper transpose)
    v_ref : (D, K+1)     augmented weight: columns [0:K] = V, column K = W1
    b_ref : (1, K+1)     augmented bias:   [bv, b1 + W0/F]  (so the field-sum of
                         column K is exactly W1(x).sum(-2) + W0)
    o_ref : (TM, out_width)  lane-padded output; cols [0:K] fm_scaled, [K:2K] embed
    """
    F, K = num_fields, embed_dim
    v = v_ref[...]
    b = b_ref[...]

    # Field 0, then statically-unrolled accumulation over the remaining fields.
    e0 = jnp.dot(x_ref[:, 0, :], v, preferred_element_type=jnp.float32) + b  # (TM, K+1)
    s_aug = e0                        # sum_f [V(x_f), x_f.w1 + b1 + W0/F]
    e0k = e0[:, :K]
    sq = e0k * e0k                    # sum_f V(x_f)**2
    for f in range(1, F):
        ef = jnp.dot(x_ref[:, f, :], v, preferred_element_type=jnp.float32) + b
        s_aug = s_aug + ef
        efk = ef[:, :K]
        sq = sq + efk * efk

    s = s_aug[:, :K]                  # embed_input = sum_f V(x_f)        (TM, K)
    lin = s_aug[:, K:K + 1]           # W1(x).sum(-2) + W0                (TM, 1)

    fm = lin + 0.5 * (s * s - sq)                                         # (TM, K)

    embed_len = jnp.sqrt(jnp.sum(s * s, axis=-1, keepdims=True) + 1e-8)
    inv_fm_len = jax.lax.rsqrt(jnp.sum(fm * fm, axis=-1, keepdims=True) + 1e-8)
    fm_scaled = fm * (inv_fm_len * embed_len)                             # (TM, K)

    if K % 128 == 0:
        # 2K is a multiple of 128 -> two aligned, unmasked stores, no concat.
        o_ref[:, :K] = fm_scaled.astype(o_ref.dtype)
        o_ref[:, K:] = s.astype(o_ref.dtype)
    else:
        # Lane-pad to a full-width (unmasked) store; wrapper slices off the pad.
        parts = [fm_scaled, s]
        pad = out_width - 2 * K
        if pad > 0:
            parts.append(jnp.zeros((fm_scaled.shape[0], pad), jnp.float32))
        o_ref[...] = jnp.concatenate(parts, axis=-1).astype(o_ref.dtype)


def _vmem_limits():
    """(pipeline-buffer budget, scoped vmem_limit_bytes) — v5e/v6e/v7x aware."""
    try:
        cap = int(pltpu.get_tpu_info().vmem_capacity_bytes)
    except Exception:
        cap = 64 << 20  # conservative: v7x per-TC VMEM
    limit = min((cap * 3) // 4, 96 << 20)
    return (limit * 2) // 3, limit


def _pick_tm(batch, num_fields, in_features, embed_dim, out_width, x_bytes, budget):
    """Largest row-block that (a) divides B, (b) fits the VMEM budget,
    (c) if possible leaves >= 2 grid steps so the parallel axis spans 2 TCs."""
    fixed = 2 * in_features * (embed_dim + 1) * x_bytes + (64 << 10)  # weights + bias

    def step_bytes(tm):
        x_buf = 2 * tm * num_fields * in_features * x_bytes   # double-buffered input
        o_buf = 2 * tm * out_width * 4                         # double-buffered output
        live = 4 * tm * (2 * embed_dim + 2) * 4                # accumulators / temps
        return fixed + x_buf + o_buf + live

    cands = [t for t in (1024, 512, 256, 128, 64, 32, 16, 8) if batch % t == 0]
    if not cands:
        return batch                      # full-block fallback (block == array dim)
    for t in cands:                       # prefer >= 2 blocks (v7x megacore)
        if batch // t >= 2 and step_bytes(t) <= budget:
            return t
    for t in cands:
        if step_bytes(t) <= budget:
            return t
    return cands[-1]


@functools.partial(jax.jit, static_argnames=("tm", "out_width", "vmem_limit"))
def _pnn_forward_jit(x, v, bv, w1, b1, w0, *, tm, out_width, vmem_limit):
    B, F, D = x.shape
    K = v.shape[1]

    # Fold W1 into V as one extra column; its bias column is b1 + W0/F so that
    # summing that column over the F fields yields exactly W1(x).sum(-2) + W0.
    v_aug = jnp.concatenate([v, w1], axis=1).astype(x.dtype)                 # (D, K+1)
    b_aug = jnp.concatenate([bv, b1 + w0 / F]).reshape(1, K + 1).astype(jnp.float32)

    kernel = functools.partial(
        _pnn_kernel, num_fields=F, embed_dim=K, out_width=out_width
    )
    out = pl.pallas_call(
        kernel,
        out_shape=jax.ShapeDtypeStruct((B, out_width), jnp.float32),
        grid_spec=pltpu.PrefetchScalarGridSpec(
            num_scalar_prefetch=0,
            grid=(B // tm,),
            in_specs=[
                pl.BlockSpec((tm, F, D), lambda i: (i, 0, 0)),   # x row-block, orig layout
                pl.BlockSpec((D, K + 1), lambda i: (0, 0)),      # augmented weight (VMEM-resident)
                pl.BlockSpec((1, K + 1), lambda i: (0, 0)),      # augmented bias
            ],
            out_specs=pl.BlockSpec((tm, out_width), lambda i: (i, 0)),
        ),
        compiler_params=pltpu.CompilerParams(
            dimension_semantics=("parallel",),   # batch axis shardable across TCs
            vmem_limit_bytes=vmem_limit,
        ),
    )(x, v_aug, b_aug)

    if out_width != 2 * K:
        out = out[:, : 2 * K]
    return out


def pnn_forward(x, v, bv, w1, b1, w0):
    """x: (B, F, D);  v: (D, K);  bv: (K,);  w1: (D, 1);  b1: (1,);  w0: (1,)."""
    B, F, D = x.shape
    K = v.shape[1]
    out_width = ((2 * K + 127) // 128) * 128          # lane-dense output slab
    budget, limit = _vmem_limits()
    x_bytes = jnp.dtype(x.dtype).itemsize
    tm = _pick_tm(B, F, D, K, out_width, x_bytes, budget)
    assert B % tm == 0
    return _pnn_forward_jit(x, v, bv, w1, b1, w0,
                            tm=tm, out_width=out_width, vmem_limit=limit)


class PNNPallas:
    """JAX/Pallas port of PNN (FM product layer + embedding layer, eval mode)."""

    def __init__(self, in_features, embed_dim, key):
        kv, kbv, kw1, kb1, kw0 = jax.random.split(key, 5)
        bound = 1.0 / (in_features ** 0.5)
        # nn.Linear-style init; weights stored (in, out) so the kernel does x @ W + b.
        self.v = jax.random.uniform(kv, (in_features, embed_dim), jnp.float32, -bound, bound)
        self.bv = jax.random.uniform(kbv, (embed_dim,), jnp.float32, -bound, bound)
        self.w1 = jax.random.uniform(kw1, (in_features, 1), jnp.float32, -bound, bound)
        self.b1 = jax.random.uniform(kb1, (1,), jnp.float32, -bound, bound)
        self.w0 = jax.random.normal(kw0, (1,), jnp.float32)  # FM.W0 = torch.randn(1)

    def __call__(self, x):
        return pnn_forward(x, self.v, self.bv, self.w1, self.b1, self.w0)


def pnn_reference(x, v, bv, w1, b1, w0):
    """Pure-JAX reference mirroring the PyTorch forward exactly."""
    lin = (jnp.einsum("bfd,do->bfo", x, w1) + b1).sum(axis=-2) + w0    # (B, 1)
    xe = jnp.einsum("bfd,dk->bfk", x, v) + bv                           # (B, F, K)
    embed = xe.sum(axis=-2)                                             # (B, K)
    ip1 = embed ** 2
    ip2 = (xe ** 2).sum(axis=-2)
    fm = lin + 0.5 * (ip1 - ip2)
    embed_len = jnp.sqrt((embed ** 2).sum(-1, keepdims=True) + 1e-8)
    fm_len = jnp.sqrt((fm ** 2).sum(-1, keepdims=True) + 1e-8)
    fm_scaled = fm / fm_len * embed_len
    return jnp.concatenate([fm_scaled, embed], axis=-1)


if __name__ == "__main__":
    key = jax.random.PRNGKey(0)
    key, xkey = jax.random.split(key)

    batch, num_fields, in_features, embed_dim = 8, 4, 32, 16

    model = PNNPallas(in_features, embed_dim, key)
    x = jax.random.normal(xkey, (batch, num_fields, in_features), jnp.float32)

    out = jax.block_until_ready(model(x))

    ref = pnn_reference(x, model.v, model.bv, model.w1, model.b1, model.w0)
    assert out.shape == (batch, 2 * embed_dim)
    assert jnp.allclose(out, ref, atol=1e-4, rtol=1e-4), "mismatch vs reference"

    print("KERNEL_OK")
</pallas_src>

<mosaic_0001>
module attributes {stable_mosaic.version = 11 : i64} {
  func.func @_pnn_kernel(%arg0: i32, %arg1: memref<8x4x32xf32, #tpu.memory_space<vmem>>, %arg2: memref<32x17xf32, #tpu.memory_space<vmem>>, %arg3: memref<1x17xf32, #tpu.memory_space<vmem>>, %arg4: memref<8x128xf32, #tpu.memory_space<vmem>>) attributes {dimension_semantics = [#tpu.dimension_semantics<parallel>], iteration_bounds = array<i64: 1>, scalar_prefetch = 0 : i64, scratch_operands = 0 : i64, tpu.core_type = #tpu.core_type<tc>, window_params = [{transform_indices = @transform_0, window_bounds = array<i64: 8, 4, 32>}, {pipeline_mode = #tpu.pipeline_mode<synchronous>, transform_indices = @transform_1, window_bounds = array<i64: 32, 17>}, {pipeline_mode = #tpu.pipeline_mode<synchronous>, transform_indices = @transform_2, window_bounds = array<i64: 1, 17>}, {transform_indices = @transform_3, window_bounds = array<i64: 8, 128>}]} {
    %c0 = arith.constant 0 : index
    %c0_0 = arith.constant 0 : index
    %0 = vector.load %arg2[%c0, %c0_0] : memref<32x17xf32, #tpu.memory_space<vmem>>, vector<32x17xf32>
    %c0_1 = arith.constant 0 : index
    %c0_2 = arith.constant 0 : index
    %1 = vector.load %arg3[%c0_1, %c0_2] : memref<1x17xf32, #tpu.memory_space<vmem>>, vector<1x17xf32>
    %c0_3 = arith.constant 0 : index
    %c0_4 = arith.constant 0 : index
    %c0_5 = arith.constant 0 : index
    %2 = vector.load %arg1[%c0_3, %c0_4, %c0_5] : memref<8x4x32xf32, #tpu.memory_space<vmem>>, vector<8x1x32xf32>
    %3 = vector.shape_cast %2 : vector<8x1x32xf32> to vector<8x32xf32>
    %cst = arith.constant dense<0.000000e+00> : vector<8x17xf32>
    %4 = tpu.matmul %3, %0, %cst {dimension_numbers = #tpu.dot_dimension_numbers<[1], [0], [0], [1], [0, 0, 1, 1], [], []>} : vector<8x32xf32>, vector<32x17xf32>, vector<8x17xf32> -> vector<8x17xf32>
    %5 = vector.broadcast %1 : vector<1x17xf32> to vector<8x17xf32>
    %6 = arith.addf %4, %5 : vector<8x17xf32>
    %7 = vector.extract_strided_slice %6 {offsets = [0, 0], sizes = [8, 16], strides = [1, 1]} : vector<8x17xf32> to vector<8x16xf32>
    %8 = arith.mulf %7, %7 : vector<8x16xf32>
    %c0_6 = arith.constant 0 : index
    %c1 = arith.constant 1 : index
    %c0_7 = arith.constant 0 : index
    %9 = vector.load %arg1[%c0_6, %c1, %c0_7] : memref<8x4x32xf32, #tpu.memory_space<vmem>>, vector<8x1x32xf32>
    %10 = vector.shape_cast %9 : vector<8x1x32xf32> to vector<8x32xf32>
    %cst_8 = arith.constant dense<0.000000e+00> : vector<8x17xf32>
    %11 = tpu.matmul %10, %0, %cst_8 {dimension_numbers = #tpu.dot_dimension_numbers<[1], [0], [0], [1], [0, 0, 1, 1], [], []>} : vector<8x32xf32>, vector<32x17xf32>, vector<8x17xf32> -> vector<8x17xf32>
    %12 = vector.broadcast %1 : vector<1x17xf32> to vector<8x17xf32>
    %13 = arith.addf %11, %12 : vector<8x17xf32>
    %14 = arith.addf %6, %13 : vector<8x17xf32>
    %15 = vector.extract_strided_slice %13 {offsets = [0, 0], sizes = [8, 16], strides = [1, 1]} : vector<8x17xf32> to vector<8x16xf32>
    %16 = arith.mulf %15, %15 : vector<8x16xf32>
    %17 = arith.addf %8, %16 : vector<8x16xf32>
    %c0_9 = arith.constant 0 : index
    %c2 = arith.constant 2 : index
    %c0_10 = arith.constant 0 : index
    %18 = vector.load %arg1[%c0_9, %c2, %c0_10] : memref<8x4x32xf32, #tpu.memory_space<vmem>>, vector<8x1x32xf32>
    %19 = vector.shape_cast %18 : vector<8x1x32xf32> to vector<8x32xf32>
    %cst_11 = arith.constant dense<0.000000e+00> : vector<8x17xf32>
    %20 = tpu.matmul %19, %0, %cst_11 {dimension_numbers = #tpu.dot_dimension_numbers<[1], [0], [0], [1], [0, 0, 1, 1], [], []>} : vector<8x32xf32>, vector<32x17xf32>, vector<8x17xf32> -> vector<8x17xf32>
    %21 = vector.broadcast %1 : vector<1x17xf32> to vector<8x17xf32>
    %22 = arith.addf %20, %21 : vector<8x17xf32>
    %23 = arith.addf %14, %22 : vector<8x17xf32>
    %24 = vector.extract_strided_slice %22 {offsets = [0, 0], sizes = [8, 16], strides = [1, 1]} : vector<8x17xf32> to vector<8x16xf32>
    %25 = arith.mulf %24, %24 : vector<8x16xf32>
    %26 = arith.addf %17, %25 : vector<8x16xf32>
    %c0_12 = arith.constant 0 : index
    %c3 = arith.constant 3 : index
    %c0_13 = arith.constant 0 : index
    %27 = vector.load %arg1[%c0_12, %c3, %c0_13] : memref<8x4x32xf32, #tpu.memory_space<vmem>>, vector<8x1x32xf32>
    %28 = vector.shape_cast %27 : vector<8x1x32xf32> to vector<8x32xf32>
    %cst_14 = arith.constant dense<0.000000e+00> : vector<8x17xf32>
    %29 = tpu.matmul %28, %0, %cst_14 {dimension_numbers = #tpu.dot_dimension_numbers<[1], [0], [0], [1], [0, 0, 1, 1], [], []>} : vector<8x32xf32>, vector<32x17xf32>, vector<8x17xf32> -> vector<8x17xf32>
    %30 = vector.broadcast %1 : vector<1x17xf32> to vector<8x17xf32>
    %31 = arith.addf %29, %30 : vector<8x17xf32>
    %32 = arith.addf %23, %31 : vector<8x17xf32>
    %33 = vector.extract_strided_slice %31 {offsets = [0, 0], sizes = [8, 16], strides = [1, 1]} : vector<8x17xf32> to vector<8x16xf32>
    %34 = arith.mulf %33, %33 : vector<8x16xf32>
    %35 = arith.addf %26, %34 : vector<8x16xf32>
    %36 = vector.extract_strided_slice %32 {offsets = [0, 0], sizes = [8, 16], strides = [1, 1]} : vector<8x17xf32> to vector<8x16xf32>
    %37 = vector.extract_strided_slice %32 {offsets = [0, 16], sizes = [8, 1], strides = [1, 1]} : vector<8x17xf32> to vector<8x1xf32>
    %38 = arith.mulf %36, %36 : vector<8x16xf32>
    %39 = arith.subf %38, %35 : vector<8x16xf32>
    %cst_15 = arith.constant 5.000000e-01 : f32
    %40 = vector.broadcast %cst_15 : f32 to vector<8x16xf32>
    %41 = arith.mulf %40, %39 : vector<8x16xf32>
    %42 = vector.broadcast %37 : vector<8x1xf32> to vector<8x16xf32>
    %43 = arith.addf %42, %41 : vector<8x16xf32>
    %44 = arith.mulf %36, %36 : vector<8x16xf32>
    %cst_16 = arith.constant dense<0.000000e+00> : vector<8xf32>
    %45 = vector.multi_reduction <add>, %44, %cst_16 [1] : vector<8x16xf32> to vector<8xf32>
    %46 = vector.shape_cast %45 : vector<8xf32> to vector<8x1xf32>
    %cst_17 = arith.constant 9.99999993E-9 : f32
    %47 = vector.broadcast %cst_17 : f32 to vector<8x1xf32>
    %48 = arith.addf %46, %47 : vector<8x1xf32>
    %49 = math.sqrt %48 : vector<8x1xf32>
    %50 = arith.mulf %43, %43 : vector<8x16xf32>
    %cst_18 = arith.constant dense<0.000000e+00> : vector<8xf32>
    %51 = vector.multi_reduction <add>, %50, %cst_18 [1] : vector<8x16xf32> to vector<8xf32>
    %52 = vector.shape_cast %51 : vector<8xf32> to vector<8x1xf32>
    %cst_19 = arith.constant 9.99999993E-9 : f32
    %53 = vector.broadcast %cst_19 : f32 to vector<8x1xf32>
    %54 = arith.addf %52, %53 : vector<8x1xf32>
    %55 = math.rsqrt %54 : vector<8x1xf32>
    %56 = arith.mulf %55, %49 : vector<8x1xf32>
    %57 = vector.broadcast %56 : vector<8x1xf32> to vector<8x16xf32>
    %58 = arith.mulf %43, %57 : vector<8x16xf32>
    %cst_20 = arith.constant 0.000000e+00 : f32
    %59 = vector.broadcast %cst_20 : f32 to vector<8x96xf32>
    %60 = tpu.concatenate %58, %36, %59 in 1 : vector<8x16xf32>, vector<8x16xf32>, vector<8x96xf32> -> vector<8x128xf32>
    %c0_21 = arith.constant 0 : index
    %c0_22 = arith.constant 0 : index
    %61 = vector.load %arg4[%c0_21, %c0_22] : memref<8x128xf32, #tpu.memory_space<vmem>>, vector<8x128xf32>
    tpu.vector_store %arg4[%c0_21, %c0_22], %60 {strides = array<i32>} : memref<8x128xf32, #tpu.memory_space<vmem>>, vector<8x128xf32>,
    return
  }
  func.func @transform_0(%arg0: i32) -> (i32, i32, i32) {
    %c0_i32 = arith.constant 0 : i32
    %c0_i32_0 = arith.constant 0 : i32
    %c0_i32_1 = arith.constant 0 : i32
    return %arg0, %c0_i32, %c0_i32_0 : i32, i32, i32
  }
  func.func @transform_1(%arg0: i32) -> (i32, i32) {
    %c0_i32 = arith.constant 0 : i32
    %c0_i32_0 = arith.constant 0 : i32
    %c0_i32_1 = arith.constant 0 : i32
    return %c0_i32, %c0_i32_0 : i32, i32
  }
  func.func @transform_2(%arg0: i32) -> (i32, i32) {
    %c0_i32 = arith.constant 0 : i32
    %c0_i32_0 = arith.constant 0 : i32
    %c0_i32_1 = arith.constant 0 : i32
    return %c0_i32, %c0_i32_0 : i32, i32
  }
  func.func @transform_3(%arg0: i32) -> (i32, i32) {
    %c0_i32 = arith.constant 0 : i32
    %c0_i32_0 = arith.constant 0 : i32
    return %arg0, %c0_i32 : i32, i32
  }
}

</mosaic_0001>

<bundles_post_ra>
// kernel: _pnn_forward_jit.1
= control target key start
LH: loop header
LB: loop body
LE: loop exit
PB: predicated region body
PF: predicated region fallthrough
CT: control target
= control target key end

     0   :  { %vm40_vm0 = vcmask 1041409   ;;  %vm43_vm1 = vcmask 1042434   ;;  %vm46_vm2 = vcmask 1043459   ;;  %vm49_vm3 = vcmask 1044484   ;;  %s526_s0 = inlined_call_operand.vmem [shape: f32[8,4,32], index: 0, kind: input, shape index: {}]   ;;  %s527_s1 = inlined_call_operand.vmem [shape: f32[32,17], index: 1, kind: input, shape index: {}]   ;;  %s528_s2 = inlined_call_operand.vmem [shape: f32[1,17], index: 2, kind: input, shape index: {}]   ;;  %s529_s3 = inlined_call_operand.hbm [shape: f32[8,128], index: 3, kind: output, shape index: {}]  }
   0x1   :  { %v18_v0 = vld [vmem:[%s527_s1 + $0x18] sm:$0xff]  ;;  %v17_v1 = vld [vmem:[%s527_s1 + $0x10] sm:$0xff]  ;;  %v16_v2 = vld [vmem:[%s527_s1 + $0x8] sm:$0xff]  ;;  %vm52_vm4 = vcmask 1045509   ;;  %vm55_vm5 = vcmask 1046534   ;;  %vm58_vm6 = vcmask 1047559  }
   0x2   :  { %183 = vmatpush.msra.mxu2 %v18_v0  ;;  %238 = vmatpush.msra.mxu3 %v18_v0  ;;  %v15_v3 = vld [vmem:[%s527_s1] sm:$0xff]  ;;  %v141_v6 = vld [vmem:[%s526_s0 + $0xa] sm:$0x1]  ;;  %v142_v7 = vld [vmem:[%s526_s0 + $0xe] sm:$0x1]  ;;  %vm60_vm7 = vcmask 261120  }
   0x3   :  { %75 = vmatpush.msra.mxu0 %v18_v0  ;;  %128 = vmatpush.msra.mxu1 %v18_v0  ;;  %v139_v4 = vld [vmem:[%s526_s0 + $0x2] sm:$0x1]  ;;  %v140_v5 = vld [vmem:[%s526_s0 + $0x6] sm:$0x1]  ;;  %v143_v8 = vld [vmem:[%s526_s0 + $0x12] sm:$0x1] }
   0x4   :  { %184 = vmatpush.msra.mxu2 %v17_v1  ;;  %239 = vmatpush.msra.mxu3 %v17_v1  ;;  %v144_v9 = vld [vmem:[%s526_s0 + $0x16] sm:$0x1]  ;;  %v145_v10 = vld [vmem:[%s526_s0 + $0x1a] sm:$0x1]  ;;  %v146_v11 = vld [vmem:[%s526_s0 + $0x1e] sm:$0x1] }
   0x5   :  { %76 = vmatpush.msra.mxu0 %v17_v1  ;;  %129 = vmatpush.msra.mxu1 %v17_v1  ;;  %v155_v12 = vrot.slane %v140_v5, 7  ;;  %v157_v13 = vrot.slane %v141_v6, 6  ;;  %v159_v14 = vrot.slane %v142_v7, 5  ;;  %v161_v15 = vrot.slane %v143_v8, 4  ;;  %v194_v19 = vld [vmem:[%s526_s0 + $0x3] sm:$0x1] }
   0x6   :  { %185 = vmatpush.msra.mxu2 %v16_v2  ;;  %240 = vmatpush.msra.mxu3 %v16_v2  ;;  %v163_v16 = vrot.slane %v144_v9, 3  ;;  %v165_v17 = vrot.slane %v145_v10, 2  ;;  %v167_v18 = vrot.slane %v146_v11, 1  ;;  %v195_v20 = vld [vmem:[%s526_s0 + $0x7] sm:$0x1] }
   0x7   :  { %77 = vmatpush.msra.mxu0 %v16_v2  ;;  %130 = vmatpush.msra.mxu1 %v16_v2  ;;  %v156_v21 = vsel %vm40_vm0, %v155_v12, %v139_v4  ;;  %v196_v22 = vld [vmem:[%s526_s0 + $0xb] sm:$0x1]  ;;  %v197_v23 = vld [vmem:[%s526_s0 + $0xf] sm:$0x1]  ;;  %v198_v24 = vld [vmem:[%s526_s0 + $0x13] sm:$0x1] }
   0x8   :  { %186 = vmatpush.msra.mxu2 %v15_v3  ;;  %241 = vmatpush.msra.mxu3 %v15_v3  ;;  %v158_v25 = vsel %vm43_vm1, %v157_v13, %v156_v21  ;;  %v199_v26 = vld [vmem:[%s526_s0 + $0x17] sm:$0x1]  ;;  %v200_v27 = vld [vmem:[%s526_s0 + $0x1b] sm:$0x1]  ;;  %v201_v28 = vld [vmem:[%s526_s0 + $0x1f] sm:$0x1] }
   0x9   :  { %78 = vmatpush.msra.mxu0 %v15_v3  ;;  %131 = vmatpush.msra.mxu1 %v15_v3  ;;  %v160_v29 = vsel %vm46_vm2, %v159_v14, %v158_v25  ;;  %v210_v30 = vrot.slane %v195_v20, 7  ;;  %v212_v31 = vrot.slane %v196_v22, 6  ;;  %v214_v32 = vrot.slane %v197_v23, 5  ;;  %v20_v33 = vld [vmem:[%s526_s0] sm:$0x1] }
   0xa   :  { %v162_v34 = vsel %vm49_vm3, %v161_v15, %v160_v29  ;;  %v216_v35 = vrot.slane %v198_v24, 4  ;;  %v218_v36 = vrot.slane %v199_v26, 3  ;;  %v220_v37 = vrot.slane %v200_v27, 2  ;;  %v21_v38 = vld [vmem:[%s526_s0 + $0x4] sm:$0x1] }
   0xb   :  { %v164_v39 = vsel %vm52_vm4, %v163_v16, %v162_v34  ;;  %v211_v40 = vsel %vm40_vm0, %v210_v30, %v194_v19  ;;  %v222_v41 = vrot.slane %v201_v28, 1  ;;  %v22_v42 = vld [vmem:[%s526_s0 + $0x8] sm:$0x1]  ;;  %v23_v43 = vld [vmem:[%s526_s0 + $0xc] sm:$0x1]  ;;  %v39_v44 = vrot.slane %v21_v38, 7 }
   0xc   :  { %v166_v45 = vsel %vm55_vm5, %v165_v17, %v164_v39  ;;  %v213_v46 = vsel %vm43_vm1, %v212_v31, %v211_v40  ;;  %v24_v47 = vld [vmem:[%s526_s0 + $0x10] sm:$0x1]  ;;  %v25_v48 = vld [vmem:[%s526_s0 + $0x14] sm:$0x1]  ;;  %v26_v49 = vld [vmem:[%s526_s0 + $0x18] sm:$0x1] }
   0xd   :  { %v168_v50 = vsel %vm58_vm6, %v167_v18, %v166_v45  ;;  %v215_v51 = vsel %vm46_vm2, %v214_v32, %v213_v46  ;;  %v27_v52 = vld [vmem:[%s526_s0 + $0x1c] sm:$0x1]  ;;  %v41_v53 = vsel %vm40_vm0, %v39_v44, %v20_v33  ;;  %v42_v54 = vrot.slane %v22_v42, 6  ;;  %v84_v59 = vld [vmem:[%s526_s0 + $0x1] sm:$0x1] }
   0xe   :  { %316 = vmatmul.msk.f32.vlgmr.msra.gmra.mxu2 %vm60_vm7, %v168_v50  ;;  %v217_v55 = vsel %vm49_vm3, %v216_v35, %v215_v51  ;;  %v45_v56 = vrot.slane %v23_v43, 5  ;;  %v48_v57 = vrot.slane %v24_v47, 4  ;;  %v51_v58 = vrot.slane %v25_v48, 3  ;;  %v85_v60 = vld [vmem:[%s526_s0 + $0x5] sm:$0x1] }
   0xf   :  { %v219_v61 = vsel %vm52_vm4, %v218_v36, %v217_v55  ;;  %v44_v62 = vsel %vm43_vm1, %v42_v54, %v41_v53  ;;  %v54_v63 = vrot.slane %v26_v49, 2  ;;  %v86_v0 = vld [vmem:[%s526_s0 + $0x9] sm:$0x1]  ;;  %v87_v1 = vld [vmem:[%s526_s0 + $0xd] sm:$0x1]  ;;  %v57_v4 = vrot.slane %v27_v52, 1 }
  0x10   :  { %v221_v2 = vsel %vm55_vm5, %v220_v37, %v219_v61  ;;  %v47_v3 = vsel %vm46_vm2, %v45_v56, %v44_v62  ;;  %v88_v5 = vld [vmem:[%s526_s0 + $0x11] sm:$0x1]  ;;  %v89_v6 = vld [vmem:[%s526_s0 + $0x15] sm:$0x1]  ;;  %v90_v9 = vld [vmem:[%s526_s0 + $0x19] sm:$0x1] }
  0x11   :  { %v223_v7 = vsel %vm58_vm6, %v222_v41, %v221_v2  ;;  %v50_v8 = vsel %vm49_vm3, %v48_v57, %v47_v3  ;;  %v100_v10 = vrot.slane %v85_v60, 7  ;;  %v102_v11 = vrot.slane %v86_v0, 6  ;;  %v91_v13 = vld [vmem:[%s526_s0 + $0x1d] sm:$0x1] }
  0x12   :  { %317 = vmatmul.msk.f32.vlgmr.msra.gmra.mxu3 %vm60_vm7, %v223_v7  ;;  %v53_v12 = vsel %vm52_vm4, %v51_v58, %v50_v8  ;;  %v104_v14 = vrot.slane %v87_v1, 5  ;;  %v106_v15 = vrot.slane %v88_v5, 4  ;;  %v108_v18 = vrot.slane %v89_v6, 3 }
  0x13   :  { %v56_v16 = vsel %vm55_vm5, %v54_v63, %v53_v12  ;;  %v101_v17 = vsel %vm40_vm0, %v100_v10, %v84_v59 }
  0x14   :  { %8 = vsyncpa [#allocation3], 0  ;;  %v59_v19 = vsel %vm58_vm6, %v57_v4, %v56_v16  ;;  %v103_v20 = vsel %vm43_vm1, %v102_v11, %v101_v17  ;;  %v110_v21 = vrot.slane %v90_v9, 2  ;;  %v112_v23 = vrot.slane %v91_v13, 1  ;;  %v322_v29 = vld [vmem:[%s528_s2] ss:$0 sm:$0xff] }
  0x15   :  { %314 = vmatmul.msk.f32.vlgmr.msra.gmra.mxu0 %vm60_vm7, %v59_v19  ;;  %v105_v22 = vsel %vm46_vm2, %v104_v14, %v103_v20  ;;  %v353_v28 = vmov 16   ;;  %vm258_vm8 = vcmask 130048   ;;  %s354_s2 = smov 16   ;;  %s355_s28 = smov [#allocation2]  }
  0x16   :  { %v107_v24 = vsel %vm49_vm3, %v106_v15, %v105_v22  ;;  %321 = vset.pattern.permute.xlu0 %v353_v28  ;;  %s303_s29 = sshll.u32 %s355_s28, 4  ;;  %s305_s5 = sshll.u32 %s529_s3, 4  ;;  %s304_s29 = int_to_ptr.vmem [resolvable:$true] %s303_s29  ;;  %s306_s5 = int_to_ptr.hbm [resolvable:$true] %s305_s5 }
  0x17   :  { %v109_v25 = vsel %vm52_vm4, %v108_v18, %v107_v24 }
  0x18   :  { %v111_v26 = vsel %vm55_vm5, %v110_v21, %v109_v25 }
  0x19   :  { %v113_v27 = vsel %vm58_vm6, %v112_v23, %v111_v26 }
  0x1a   :  { %315 = vmatmul.msk.f32.vlgmr.msra.gmra.mxu1 %vm60_vm7, %v113_v27 }
  0x91   :  { %v188_v31 = vpop.f32.mrf.mxu2 }
  0x92   :  { %v80_v30 = vpop.f32.mrf.mxu0  ;;  %v189_v34 = vadd.f32 %v322_v29, %v188_v31 }
  0x93   :  { %v81_v32 = vadd.f32 %v322_v29, %v80_v30 }
  0x94   :  { %v192_v41 = vmul.f32 %v189_v34, %v189_v34 }
  0x95   :  { %v243_v33 = vpop.f32.mrf.mxu3  ;;  %v83_v36 = vmul.f32 %v81_v32, %v81_v32 }
  0x96   :  { %v244_v38 = vadd.f32 %v322_v29, %v243_v33 }
  0x97   :  { %v133_v35 = vpop.f32.mrf.mxu1 }
  0x98   :  { %v134_v37 = vadd.f32 %v322_v29, %v133_v35  ;;  %v247_v44 = vmul.f32 %v244_v38, %v244_v38 }
  0x9a   :  { %v136_v39 = vadd.f32 %v134_v37, %v81_v32  ;;  %v137_v40 = vmul.f32 %v134_v37, %v134_v37 }
  0x9c   :  { %v138_v42 = vadd.f32 %v137_v40, %v83_v36  ;;  %v191_v43 = vadd.f32 %v189_v34, %v136_v39 }
  0x9e   :  { %v193_v45 = vadd.f32 %v192_v41, %v138_v42  ;;  %v246_v46 = vadd.f32 %v244_v38, %v191_v43 }
  0xa0   :  { %v248_v47 = vadd.f32 %v247_v44, %v193_v45  ;;  %254 = vperm.xlu0 %321, %v246_v46   ;;  %v249_v48 = vmul.f32 %v246_v46, %v246_v46 }
  0xa2   :  { %v250_v49 = vsub.f32 %v249_v48, %v248_v47  ;;  %v259_v50 = vsel %vm258_vm8, %v249_v48, 0.0 }
  0xa4   :  { %v251_v51 = vmul.f32 0.5, %v250_v49 }
  0xca   :  { %260 = vadd.xlane.f32.xlu0 %v259_v50 }
 0x112   :  { %v255_v52 = vpop.permute.xlu0 %254 }
 0x113   :  { %v257_v53 = vadd.f32 %v255_v52, %v251_v51 }
 0x115   :  { %v275_v54 = vmul.f32 %v257_v53, %v257_v53 }
 0x117   :  { %v276_v55 = vsel %vm258_vm8, %v275_v54, 0.0 }
 0x118   :  { %277 = vadd.xlane.f32.xlu1 %v276_v55 }
 0x131   :  { %292 = vrot.lane.b32.xlu1 %v246_v46, %s354_s2 }
 0x13d   :  { %v261_v56 = vpop.xlane.xlu0 %260 }
 0x13e   :  { %v262_v57 = vadd.f32 1e-08, %v261_v56 }
 0x140   :  { %323 = vrsqrt.f32 %v262_v57  ;;  %vm270_vm10 = vcmp.eq.f32.partialorder %v262_v57, inf  ;;  %v273_v10 = vand.u32 2147483648, %v262_v57  ;;  %vm272_vm13 = vcmp.eq.f32.partialorder %v262_v57, 0.0 }
 0x146   :  { %v324_v58 = vpop.eup %323 }
 0x147   :  { %v264_v59 = vmul.f32 %v324_v58, %v262_v57 }
 0x149   :  { %v265_v60 = vmul.f32 %v324_v58, %v264_v59 }
 0x14b   :  { %v266_v63 = vmul.f32 0.5, %v265_v60 }
 0x14d   :  { %v267_v0 = vsub.f32 1.5, %v266_v63 }
 0x14f   :  { %v268_v2 = vmul.f32 %v324_v58, %v267_v0 }
 0x151   :  { %v269_v5 = vmul.f32 %v268_v2, %v262_v57 }
 0x153   :  { %v271_v8 = vsel %vm270_vm10, %v262_v57, %v269_v5 }
 0x154   :  { %v274_v12 = vsel %vm272_vm13, %v273_v10, %v271_v8 }
 0x18b   :  { %v278_v61 = vpop.xlane.xlu1 %277 }
 0x18c   :  { %v279_v62 = vadd.f32 1e-08, %v278_v61 }
 0x18e   :  { %325 = vrsqrt.f32 %v279_v62  ;;  %vm286_vm11 = vweird.f32 %v279_v62 }
 0x194   :  { %v326_v1 = vpop.eup %325 }
 0x195   :  { %v281_v3 = vmul.f32 %v326_v1, %v279_v62  ;;  %vm287_vm9 = vweird.f32 %v326_v1 }
 0x196   :  { %vm288_vm12 = vmor %vm286_vm11, %vm287_vm9 }
 0x197   :  { %v282_v4 = vmul.f32 %v326_v1, %v281_v3 }
 0x199   :  { %v283_v6 = vmul.f32 0.5, %v282_v4 }
 0x19b   :  { %v284_v7 = vsub.f32 1.5, %v283_v6 }
 0x19d   :  { %v285_v9 = vmul.f32 %v326_v1, %v284_v7 }
 0x19f   :  { %v289_v11 = vsel %vm288_vm12, %v326_v1, %v285_v9 }
 0x1a0   :  { %v290_v13 = vmul.f32 %v289_v11, %v274_v12 }
 0x1a2   :  { %v291_v14 = vmul.f32 %v290_v13, %v257_v53 }
 0x1a3   :  { %v293_v15 = vpop.permute.xlu1 %292 }
 0x1a4   :  { %v295_v16 = vsel %vm258_vm8, %v291_v14, %v293_v15 }
 0x1a5   :  { %v296_v17 = vsel %vm60_vm7, %v295_v16, 0.0 }
 0x1a6   :  { %297 = vst [vmem:[#allocation2] sm:$0xff] %v296_v17 }
 0x1a7   :  { %308 = dma.vmem_to_hbm [thread:$0]  %s304_s29, 128, %s306_s5, [#allocation3]  }
 0x1a8   :  { %351 = dma.done.wait [#allocation3], 128  }
 0x1a9   :  { %352 = vsyncadd [#allocation3], 4294967168 }
 0x1aa   :  { %313 = vsyncpa [#allocation3], 1 }

</bundles_post_ra>
